<compile_context>
chip_gen: v6e
topology: v6e:2x2x1
jax: 0.10.0
libtpu: 0.0.40
codegen_flags: <defaults>
</compile_context>

<pallas_src>
import jax
import jax.numpy as jnp
from jax import lax
from jax.experimental import pallas as pl
from jax.experimental.pallas import tpu as pltpu


def pooler_kernel(x_ref, w_ref, b_ref, o_ref):
    # x_ref : (Bp, H_in)       resident first-token activations (fetched once)
    # w_ref : (TN, H_in)       weight tile, native (H_out, H_in) layout (streamed)
    # b_ref : (num_tiles, TN)  full bias, resident; row j <-> grid step j
    # o_ref : (Bp, TN)
    j = pl.program_id(0)
    # x @ W.T on the MXU: contract the lane dims of both operands directly so
    # the weight never needs a host- or VMEM-side transpose.
    # (If pl.lower_as_mlir ever shows a materialized (H_in, TN) weight copy on
    #  some generation, switch to pl.dot(x, w, trans_b=True) instead.)
    y = lax.dot_general(
        x_ref[...], w_ref[...],
        dimension_numbers=(((1,), (1,)), ((), ())),
        preferred_element_type=jnp.float32,
    )                                                     # (Bp, TN) f32 accumulate
    y = y + b_ref[pl.ds(j, 1), :].astype(jnp.float32)     # resident bias, row j
    o_ref[...] = jnp.tanh(y).astype(o_ref.dtype)          # EUP tanh


def _pick_tn(h, w_itemsize, *, weight_buf_bytes=12 * 1024 * 1024, n_buffers=3):
    """VMEM-budgeted, grid-aware H_out tile.

    Largest lane-aligned (multiple-of-128) tile such that
      (a) `n_buffers` weight tiles of (tn, h) fit in `weight_buf_bytes`
          (<= ~12 MiB: safe on v5e's 16 MiB scoped default, v6e, and v7x),
      (b) tn divides H exactly (lane-dense, unmasked output stores),
      (c) grid = H // tn >= 2, so the weight stream is pipelined and the
          "parallel" grid axis can shard across v7x's two TensorCores.
    Small or non-128-aligned H falls back to a single full-width tile.
    """
    if h % 128 != 0 or h < 256:
        return h
    cap = (weight_buf_bytes // (n_buffers * h * w_itemsize)) // 128 * 128
    tn = min(h // 2, max(128, cap))
    tn = (tn // 128) * 128
    while h % tn != 0:      # terminates: 128 always divides h here
        tn -= 128
    return tn


def pooler_forward(hidden_states, weight, bias):
    """BERT Pooler forward: tanh(hidden_states[:, 0] @ weight.T + bias).

    hidden_states: (B, S, H); weight: (H_out=H, H_in=H) [f32 or bf16]; bias: (H,).
    Recommended caller default: feed the weight in bf16 (kernel accumulates in
    f32) — the kernel is HBM-bound on the H^2 weight read, so this is ~2x.
    """
    B, S, H = hidden_states.shape
    assert weight.shape == (H, H)
    assert bias.shape == (H,)

    # Slice the first token in the wrapper -> one contiguous, lane-dense (B, H)
    # slab (no (B, 1, H) strided per-row DMAs inside the kernel).
    x = hidden_states[:, 0, :]

    # bf16-weight path: cast activations ONCE here (halves the x HBM read and
    # removes a repeated (Bp x H) VPU cast every grid step inside the kernel).
    if x.dtype != weight.dtype:
        x = x.astype(weight.dtype)

    out_dtype = hidden_states.dtype

    # Pad the batch to full sublane packing for the narrowest dtype touched
    # (8 rows for f32, 16 for bf16, 32 for 1-byte) -> unmasked vregs/stores.
    min_itemsize = min(x.dtype.itemsize, jnp.dtype(out_dtype).itemsize)
    pack = max(8, 32 // min_itemsize)
    Bp = -(-B // pack) * pack
    if Bp != B:
        x = jnp.pad(x, ((0, Bp - B), (0, 0)))

    # VMEM-budgeted, grid-aware H_out tile; grid >= 2 whenever H is 128-aligned.
    tn = _pick_tn(H, weight.dtype.itemsize)
    num_tiles = H // tn
    grid = (num_tiles,)

    # Bias laid out so row j corresponds to grid step j; fetched once (resident).
    bias2d = bias.reshape(num_tiles, tn)

    # Weight pipeline depth: triple-buffer once there are enough steps to
    # benefit (per-step compute is tiny, so the weight DMA is fully exposed).
    if num_tiles >= 3:
        w_spec = pl.BlockSpec((tn, H), lambda j: (j, 0),
                              pipeline_mode=pl.Buffered(3))
    else:
        w_spec = pl.BlockSpec((tn, H), lambda j: (j, 0))

    out = pl.pallas_call(
        pooler_kernel,
        out_shape=jax.ShapeDtypeStruct((Bp, H), out_dtype),
        grid_spec=pltpu.PrefetchScalarGridSpec(
            num_scalar_prefetch=0,
            grid=grid,
            in_specs=[
                # Activations: small, resident across all H_out tiles (constant
                # index map -> fetched once). For very large Bp*H, add
                # pipeline_mode=pl.Buffered(1) here to drop the unused 2nd buffer.
                pl.BlockSpec((Bp, H), lambda j: (0, 0)),
                # Weight: streamed tile-by-tile along H_out in its native
                # (H_out, H_in) layout (lane-dense in H_in).
                w_spec,
                # Bias: one full resident block, indexed per tile in-kernel.
                pl.BlockSpec((num_tiles, tn), lambda j: (0, 0)),
            ],
            out_specs=pl.BlockSpec((Bp, tn), lambda j: (0, j)),
        ),
        compiler_params=pltpu.CompilerParams(
            # H_out tiles are independent -> parallel (megacore on v7x).
            dimension_semantics=("parallel",),
            # The ~12 MiB weight-buffer budget keeps the working set well under
            # this on every generation (v5e/v6e/v7x scoped defaults included).
            vmem_limit_bytes=32 * 1024 * 1024,
        ),
    )(x, weight, bias2d)

    return out[:B]


def pooler_reference(hidden_states, weight, bias):
    first = hidden_states[:, 0]
    return jnp.tanh(first @ weight.T + bias)


if __name__ == "__main__":
    key = jax.random.PRNGKey(0)
    k_x, k_w, k_b, k_x2, k_w2, k_b2 = jax.random.split(key, 6)

    # --- Test 1: spec-sized small shapes (B=2, S=8, H=32) -> grid=(1,) path.
    B, S, H = 2, 8, 32
    hidden_states = jax.random.normal(k_x, (B, S, H), dtype=jnp.float32)
    weight = jax.random.normal(k_w, (H, H), dtype=jnp.float32) * (1.0 / jnp.sqrt(H))
    bias = jax.random.normal(k_b, (H,), dtype=jnp.float32) * 0.01

    ref = pooler_reference(hidden_states, weight, bias)
    out = jax.block_until_ready(pooler_forward(hidden_states, weight, bias))
    assert out.shape == (B, H)
    assert jnp.allclose(out, ref, atol=1e-5, rtol=1e-5)

    # --- Test 2: tiled path (H=256 -> TN=128, grid=(2,)); odd batch exercises
    # sublane padding and the padded-row slice-off.
    B2, S2, H2 = 3, 4, 256
    hs2 = jax.random.normal(k_x2, (B2, S2, H2), dtype=jnp.float32)
    w2 = jax.random.normal(k_w2, (H2, H2), dtype=jnp.float32) * (1.0 / jnp.sqrt(H2))
    b2 = jax.random.normal(k_b2, (H2,), dtype=jnp.float32) * 0.01

    ref2 = pooler_reference(hs2, w2, b2)
    out2 = jax.block_until_ready(pooler_forward(hs2, w2, b2))
    assert out2.shape == (B2, H2)
    assert jnp.allclose(out2, ref2, atol=1e-5, rtol=1e-5)

    # --- Test 3: bandwidth-optimized bf16 weight feed (recommended default):
    # activations cast once in the wrapper, f32 accumulation, Bp padded to 16.
    out2_bf16 = jax.block_until_ready(
        pooler_forward(hs2, w2.astype(jnp.bfloat16), b2))
    assert out2_bf16.shape == (B2, H2)
    assert jnp.allclose(out2_bf16, ref2, atol=3e-2, rtol=3e-2)

    print("KERNEL_OK")
</pallas_src>

<mosaic_0001>
module attributes {stable_mosaic.version = 11 : i64} {
  func.func @pooler_kernel(%arg0: i32, %arg1: memref<8x32xf32, #tpu.memory_space<vmem>>, %arg2: memref<32x32xf32, #tpu.memory_space<vmem>>, %arg3: memref<1x32xf32, #tpu.memory_space<vmem>>, %arg4: memref<8x32xf32, #tpu.memory_space<vmem>>) attributes {dimension_semantics = [#tpu.dimension_semantics<parallel>], iteration_bounds = array<i64: 1>, scalar_prefetch = 0 : i64, scratch_operands = 0 : i64, tpu.core_type = #tpu.core_type<tc>, window_params = [{pipeline_mode = #tpu.pipeline_mode<synchronous>, transform_indices = @transform_0, window_bounds = array<i64: 8, 32>}, {transform_indices = @transform_1, window_bounds = array<i64: 32, 32>}, {pipeline_mode = #tpu.pipeline_mode<synchronous>, transform_indices = @transform_2, window_bounds = array<i64: 1, 32>}, {transform_indices = @transform_3, window_bounds = array<i64: 8, 32>}]} {
    %c0 = arith.constant 0 : index
    %c0_0 = arith.constant 0 : index
    %0 = vector.load %arg1[%c0, %c0_0] : memref<8x32xf32, #tpu.memory_space<vmem>>, vector<8x32xf32>
    %c0_1 = arith.constant 0 : index
    %c0_2 = arith.constant 0 : index
    %1 = vector.load %arg2[%c0_1, %c0_2] : memref<32x32xf32, #tpu.memory_space<vmem>>, vector<32x32xf32>
    %cst = arith.constant dense<0.000000e+00> : vector<8x32xf32>
    %2 = tpu.matmul %0, %1, %cst {dimension_numbers = #tpu.dot_dimension_numbers<[1], [1], [0], [0], [0, 0, 1, 0], [], []>} : vector<8x32xf32>, vector<32x32xf32>, vector<8x32xf32> -> vector<8x32xf32>
    %3 = arith.index_cast %arg0 : i32 to index
    %c0_3 = arith.constant 0 : index
    %4 = vector.load %arg3[%3, %c0_3] : memref<1x32xf32, #tpu.memory_space<vmem>>, vector<1x32xf32>
    %5 = vector.broadcast %4 : vector<1x32xf32> to vector<8x32xf32>
    %6 = arith.addf %2, %5 : vector<8x32xf32>
    %7 = math.tanh %6 : vector<8x32xf32>
    %c0_4 = arith.constant 0 : index
    %c0_5 = arith.constant 0 : index
    %8 = vector.load %arg4[%c0_4, %c0_5] : memref<8x32xf32, #tpu.memory_space<vmem>>, vector<8x32xf32>
    tpu.vector_store %arg4[%c0_4, %c0_5], %7 {strides = array<i32>} : memref<8x32xf32, #tpu.memory_space<vmem>>, vector<8x32xf32>,
    return
  }
  func.func @transform_0(%arg0: i32) -> (i32, i32) {
    %c0_i32 = arith.constant 0 : i32
    %c0_i32_0 = arith.constant 0 : i32
    %c0_i32_1 = arith.constant 0 : i32
    return %c0_i32, %c0_i32_0 : i32, i32
  }
  func.func @transform_1(%arg0: i32) -> (i32, i32) {
    %c0_i32 = arith.constant 0 : i32
    %c0_i32_0 = arith.constant 0 : i32
    return %arg0, %c0_i32 : i32, i32
  }
  func.func @transform_2(%arg0: i32) -> (i32, i32) {
    %c0_i32 = arith.constant 0 : i32
    %c0_i32_0 = arith.constant 0 : i32
    %c0_i32_1 = arith.constant 0 : i32
    return %c0_i32, %c0_i32_0 : i32, i32
  }
  func.func @transform_3(%arg0: i32) -> (i32, i32) {
    %c0_i32 = arith.constant 0 : i32
    %c0_i32_0 = arith.constant 0 : i32
    return %c0_i32, %arg0 : i32, i32
  }
}

</mosaic_0001>

<bundles_post_ra>
// kernel: tpu_custom_call.1
= control target key start
LH: loop header
LB: loop body
LE: loop exit
PB: predicated region body
PF: predicated region fallthrough
CT: control target
= control target key end

     0   :  { %8 = vsyncpa [#allocation3], 0  ;;  %s299_s0 = inlined_call_operand.hbm [shape: f32[8,32], index: 0, kind: input, shape index: {}]   ;;  %s300_s1 = inlined_call_operand.hbm [shape: f32[32,32], index: 1, kind: input, shape index: {}]   ;;  %s301_s2 = inlined_call_operand.vmem [shape: f32[1,32], index: 2, kind: input, shape index: {}]   ;;  %s302_s3 = inlined_call_operand.hbm [shape: f32[8,32], index: 3, kind: output, shape index: {}]  }
   0x1   :  { %9 = vsyncpa [#allocation6], 0 }
   0x2   :  { %10 = vsyncpa [#allocation4], 0  ;;  %s254_s12 = smov [#allocation2]   ;;  %s255_s14 = smov [#allocation5]  }
   0x3   :  { %s17_s13 = sshll.u32 %s254_s12, 4  ;;  %s26_s15 = sshll.u32 %s255_s14, 4  ;;  %s18_s13 = int_to_ptr.vmem [resolvable:$true] %s17_s13  ;;  %s27_s15 = int_to_ptr.vmem [resolvable:$true] %s26_s15 }
   0x4   :  { %s196_s16 = scalar_lea.vmem %s18_s13, 128  ;;  %p201_p1 = scmp.lt.s32.totalorder %s18_s13, %s18_s13 }
   0x5   :  { %p197_p0 = scmp.ne.s32.totalorder %s18_s13, %s196_s16  ;;  %p202_p2 = scmp.lt.s32.totalorder %s196_s16, %s196_s16 }
   0x7   :  { %p203_p3 = por %p202_p2, %p201_p1 }
   0x9   :  { %p204_p4 = pnand %p203_p3, %p197_p0 }
   0xb   :  { %207 = shalt.err (!%p204_p4)
}
   0xc   :  { %20 = dma.hbm_to_vmem [thread:$0]  %s299_s0, 128, %s18_s13, [#allocation3]  }
   0xd   :  { %s216_s19 = scalar_lea.vmem %s27_s15, 512  ;;  %p221_p6 = scmp.lt.s32.totalorder %s27_s15, %s27_s15 }
   0xe   :  { %p217_p5 = scmp.ne.s32.totalorder %s27_s15, %s216_s19  ;;  %p222_p7 = scmp.lt.s32.totalorder %s216_s19, %s216_s19 }
  0x10   :  { %p223_p8 = por %p222_p7, %p221_p6 }
  0x12   :  { %p224_p9 = pnand %p223_p8, %p217_p5 }
  0x14   :  { %227 = shalt.err (!%p224_p9)
}
  0x15   :  { %s256_s20 = smov 128   ;;  %s257_s21 = smov 8  }
  0x16   :  { %32 = dma.hbm_to_vmem [thread:$0]  %s300_s1, 512, %s27_s15, [#allocation6], %s256_s20, %s256_s20, %s257_s21  }
  0x17   :  { %248 = dma.done.wait [#allocation3], 128  }
  0x18   :  { %249 = vsyncadd [#allocation3], 4294967168 }
  0x19   :  { %250 = dma.done.wait [#allocation6], 512  }
  0x1a   :  { %251 = vsyncadd [#allocation6], 4294966784  ;;  %v258_v0 = vmov 0.0   ;;  %vm259_vm0 = vmmov 0   ;;  %vm53_vm1 = vcmask 261120   ;;  %v45_v1 = vld [vmem:[#allocation5 + $0x18] sm:$0xff] }
  0x1b   :  { %168 = vmatprep.subr.mxu0 %v258_v0  ;;  %176 = vmatprep.mubr.msk.f32.mxu0 %vm259_vm0, %v258_v0  ;;  %v44_v2 = vld [vmem:[#allocation5 + $0x10] sm:$0xff]  ;;  %v43_v3 = vld [vmem:[#allocation5 + $0x8] sm:$0xff]  ;;  %v42_v4 = vld [vmem:[#allocation5] sm:$0xff]  ;;  %s260_s24 = smov [#allocation7]  }
  0x1c   :  { %169 = vmatpush3.xpose.msk.msra.mxu0 %vm53_vm1, %v45_v1  ;;  %v41_v5 = vld [vmem:[#allocation2] sm:$0xff]  ;;  %s147_s25 = sshll.u32 %s260_s24, 4  ;;  %s148_s25 = int_to_ptr.vmem [resolvable:$true] %s147_s25 }
  0x1d   :  { %170 = vmatprep.subr.mxu0 %v258_v0  ;;  %v157_v6 = vld [vmem:[%s301_s2] ss:$0 sm:$0xff]  ;;  %s228_s26 = scalar_lea.vmem %s148_s25, 128  ;;  %p233_p11 = scmp.lt.s32.totalorder %s148_s25, %s148_s25 }
  0x1e   :  { %p229_p10 = scmp.ne.s32.totalorder %s148_s25, %s228_s26  ;;  %p234_p12 = scmp.lt.s32.totalorder %s228_s26, %s228_s26 }
  0x20   :  { %171 = vmatpush3.xpose.msk.msra.mxu0 %vm53_vm1, %v44_v2  ;;  %p235_p13 = por %p234_p12, %p233_p11 }
  0x21   :  { %172 = vmatprep.subr.mxu0 %v258_v0 }
  0x22   :  { %p236_p0 = pnand %p235_p13, %p229_p10 }
  0x24   :  { %173 = vmatpush3.xpose.msk.msra.mxu0 %vm53_vm1, %v43_v3 }
  0x25   :  { %174 = vmatprep.subr.mxu0 %v258_v0 }
  0x28   :  { %175 = vmatpush3.xpose.msk.msra.mxu0 %vm53_vm1, %v42_v4 }
  0x2b   :  { %177 = vmatmul.mubr.msk.f32.vlgmr.msra.gmra.mxu0 %vm53_vm1, %v41_v5 }
  0xeb   :  { %v135_v7 = vpop.f32.mrf.mxu0 }
  0xec   :  { %v136_v8 = vadd.f32 %v157_v6, %v135_v7 }
  0xed   :  { %v178_v9 = vpop.f32.mrf.mxu0 }
  0xee   :  { %186 = vtanh.f32 %v136_v8 }
  0xfb   :  { %v187_v10 = vpop.eup %186 }
  0xfc   :  { %140 = vst.msk [vmem:[#allocation7] sm:$0xff] %vm53_vm1, %v187_v10 }
  0xfd   :  { %239 = shalt.err (!%p236_p0)
}
  0xfe   :  { %150 = dma.vmem_to_hbm [thread:$0]  %s148_s25, 128, %s302_s3, [#allocation4]  }
  0xff   :  { %252 = dma.done.wait [#allocation4], 128  }
 0x100   :  { %253 = vsyncadd [#allocation4], 4294967168 }
 0x101   :  { %154 = vsyncpa [#allocation3], 1 }
 0x102   :  { %155 = vsyncpa [#allocation6], 1 }
 0x103   :  { %156 = vsyncpa [#allocation4], 1 }

</bundles_post_ra>
